<compile_context>
chip_gen: v7x
topology: tpu7x:2x2x1
jax: 0.10.0
libtpu: 0.0.40
codegen_flags: <defaults>
</compile_context>

<pallas_src>
import functools

import numpy as np
import jax
import jax.numpy as jnp
from jax.experimental import pallas as pl
from jax.experimental.pallas import tpu as pltpu


def _round_up(x, m):
    return (x + m - 1) // m * m


def _seg_flash_kernel(kb0_ref, nkb_ref,                       # SMEM scalar prefetch
                      lo_ref, hi_ref, hq_ref, xk_ref, hk_ref,  # VMEM inputs
                      out_ref,                                 # VMEM output
                      m_sc, l_sc, acc_sc,                      # VMEM scratch
                      *, kb_rows, matmul_dtype):
    """Grid = (query tile i, key block k within that tile's dialogue window).

    kb0_ref : SMEM (nqt,) int32  - first key-block index of tile i's window
    nkb_ref : SMEM (nqt,) int32  - number of key blocks in tile i's window
    lo_ref  : VMEM (TQ, 1) int32 - per query row: first flat row of its dialogue
    hi_ref  : VMEM (TQ, 1) int32 - per query row: one-past-last flat row
    hq_ref  : VMEM (TQ, Dp) f32  - query rows (h)
    xk_ref  : VMEM (KB, Dp) f32  - key rows of x = lin(h) for this key block
    hk_ref  : VMEM (KB, Dp) f32  - key/value rows of h for this key block
    out_ref : VMEM (TQ, Dp) f32  - attention output tile
    """
    i = pl.program_id(0)
    k = pl.program_id(1)

    @pl.when(k == 0)
    def _init():
        m_sc[...] = jnp.full(m_sc.shape, -1e30, jnp.float32)
        l_sc[...] = jnp.zeros(l_sc.shape, jnp.float32)
        acc_sc[...] = jnp.zeros(acc_sc.shape, jnp.float32)

    # Skip key blocks beyond this tile's window (their DMA is a clamped repeat).
    @pl.when(k < nkb_ref[i])
    def _accumulate():
        hq = hq_ref[...].astype(matmul_dtype)                       # (TQ, Dp)
        xk = xk_ref[...].astype(matmul_dtype)                       # (KB, Dp)
        # scores[q, j] = <h_q, x_j>  (contraction over lane-dense Dp)
        s = jax.lax.dot_general(hq, xk, (((1,), (1,)), ((), ())),
                                preferred_element_type=jnp.float32)  # (TQ, KB)

        # segment mask: query row q may only attend to flat rows in [lo_q, hi_q)
        base = (kb0_ref[i] + k) * kb_rows
        col = jax.lax.broadcasted_iota(jnp.int32, s.shape, 1) + base
        valid = (col >= lo_ref[...]) & (col < hi_ref[...])
        s = jnp.where(valid, s, jnp.float32(-1e30))

        # online softmax update (masked entries underflow to exact 0 after shift)
        m_prev = m_sc[...]
        m_new = jnp.maximum(m_prev, jnp.max(s, axis=1, keepdims=True))
        alpha = jnp.exp(m_prev - m_new)
        p = jnp.exp(s - m_new)
        l_sc[...] = alpha * l_sc[...] + jnp.sum(p, axis=1, keepdims=True)
        acc_sc[...] = alpha * acc_sc[...] + jnp.dot(
            p.astype(matmul_dtype), hk_ref[...].astype(matmul_dtype),
            preferred_element_type=jnp.float32)
        m_sc[...] = m_new

    @pl.when(k == pl.num_programs(1) - 1)
    def _finalize():
        out_ref[...] = (acc_sc[...] *
                        pl.reciprocal(l_sc[...], approx=False)).astype(out_ref.dtype)


def masked_emotion_att(h, text_len, W, b, *, tq=256, kb=256,
                       matmul_dtype=jnp.float32):
    """Pallas implementation of MaskedEmotionAtt.forward on the flat packed layout.

    h        : (N, D) float32, N == sum(text_len)
    text_len : (B,)   int     - per-dialogue utterance counts (must be concrete)
    W, b     : nn.Linear(D, D) parameters: W (D, D), b (D,)
    tq, kb   : query-row tile / key-block sizes (multiples of 8; 128/256 in prod)
    matmul_dtype : dtype fed to the MXU (f32 for exact parity, bf16 for v6e/v7x speed)
    """
    h = jnp.asarray(h, jnp.float32)
    W = jnp.asarray(W, jnp.float32)
    b = jnp.asarray(b, jnp.float32)
    N, D = h.shape
    assert tq % 8 == 0 and kb % 8 == 0

    lengths = np.asarray(jax.device_get(text_len)).astype(np.int64)
    B = int(lengths.shape[0])
    assert int(lengths.sum()) == N

    # ---- hoisted projection: ONE XLA matmul, never recomputed inside the kernel ----
    x = h @ W.T + b[None, :]

    # ---- lane-dense padding: feature dim to a multiple of 128, rows to tile sizes ----
    Dp = _round_up(D, 128)
    Np = _round_up(N, tq)        # padded query rows
    NKp = _round_up(N, kb)       # padded key rows
    h_q = jnp.zeros((Np, Dp), jnp.float32).at[:N, :D].set(h)
    h_k = jnp.zeros((NKp, Dp), jnp.float32).at[:N, :D].set(h)
    x_k = jnp.zeros((NKp, Dp), jnp.float32).at[:N, :D].set(x)

    # ---- O(N) host bookkeeping (text_len concrete, like the torch .item() loop) ----
    cum = np.cumsum(lengths)
    off = cum - lengths
    rows = np.arange(Np)
    seg = np.minimum(np.searchsorted(cum, rows, side="right"), B - 1)
    real = rows < N
    lo_np = np.where(real, off[seg], 0).astype(np.int32)   # pad rows: fully masked
    hi_np = np.where(real, cum[seg], 0).astype(np.int32)

    nqt = Np // tq
    win_lo = np.where(real, lo_np.astype(np.int64), np.int64(NKp)).reshape(nqt, tq).min(axis=1)
    win_hi = hi_np.astype(np.int64).reshape(nqt, tq).max(axis=1)
    last_kb = NKp // kb - 1
    kb0_np = np.clip(win_lo // kb, 0, last_kb).astype(np.int32)
    nkb_np = np.maximum(-(-(win_hi - kb0_np.astype(np.int64) * kb) // kb), 1).astype(np.int32)
    nkb_max = int(nkb_np.max())

    lo = jnp.asarray(lo_np).reshape(Np, 1)
    hi = jnp.asarray(hi_np).reshape(Np, 1)
    kb0 = jnp.asarray(kb0_np)
    nkb = jnp.asarray(nkb_np)

    # ---- index maps (scalar-prefetch refs arrive as trailing positional args) ----
    def q_map(i, k, kb0_ref, nkb_ref):
        return (i, 0)

    def key_map(i, k, kb0_ref, nkb_ref):
        return (jnp.minimum(kb0_ref[i] + k, last_kb), 0)

    kernel = functools.partial(_seg_flash_kernel, kb_rows=kb,
                               matmul_dtype=matmul_dtype)

    # VMEM budget: double-buffered blocked inputs/outputs + scratch + score temps.
    est = (2 * 2 * tq * 4                 # lo, hi
           + 2 * tq * Dp * 4              # h query tile
           + 2 * 2 * kb * Dp * 4          # x / h key blocks
           + 2 * tq * Dp * 4              # output tile
           + (2 * tq + tq * Dp) * 4       # m, l, acc scratch
           + 6 * tq * kb * 4)             # in-kernel (TQ, KB) temporaries
    vmem_limit = int(min(max(2 * est, 32 * 1024 * 1024), 64 * 1024 * 1024))

    n_steps = int(nkb_np.sum())           # key-block steps actually computed
    cost = pl.CostEstimate(
        flops=int(4 * tq * kb * Dp * n_steps),
        transcendentals=int(tq * kb * n_steps + 2 * tq * n_steps),
        bytes_accessed=int(4 * (2 * Np * Dp + 2 * n_steps * kb * Dp)),
    )

    out_pad = pl.pallas_call(
        kernel,
        out_shape=jax.ShapeDtypeStruct((Np, Dp), jnp.float32),
        grid_spec=pltpu.PrefetchScalarGridSpec(
            num_scalar_prefetch=2,
            grid=(nqt, nkb_max),
            in_specs=[
                pl.BlockSpec((tq, 1), q_map),      # lo  (per-row dialogue start)
                pl.BlockSpec((tq, 1), q_map),      # hi  (per-row dialogue end)
                pl.BlockSpec((tq, Dp), q_map),     # h   (query tile)
                pl.BlockSpec((kb, Dp), key_map),   # x   (key block of lin(h))
                pl.BlockSpec((kb, Dp), key_map),   # h   (key/value block)
            ],
            out_specs=pl.BlockSpec((tq, Dp), q_map),
            scratch_shapes=[
                pltpu.VMEM((tq, 1), jnp.float32),   # running max m
                pltpu.VMEM((tq, 1), jnp.float32),   # running denom l
                pltpu.VMEM((tq, Dp), jnp.float32),  # running numerator acc
            ],
        ),
        compiler_params=pltpu.CompilerParams(
            dimension_semantics=("parallel", "arbitrary"),
            vmem_limit_bytes=vmem_limit,
        ),
        cost_estimate=cost,
    )(kb0, nkb, lo, hi, h_q, x_k, h_k)

    return out_pad[:N, :D]


def _reference(h, lengths, W, b):
    """NumPy reference reproducing the PyTorch forward exactly."""
    x = h @ W.T + b
    ret = np.zeros_like(h)
    s = 0
    for L in lengths:
        L = int(L)
        y = x[s:s + L]
        z = h[s:s + L]
        sc = z @ y.T
        sc = sc - sc.max(axis=1, keepdims=True)
        p = np.exp(sc)
        p = p / p.sum(axis=1, keepdims=True)
        ret[s:s + L, :] = p @ z
        s += L
    return ret


if __name__ == "__main__":
    key = jax.random.PRNGKey(0)
    k_h, k_w, k_b = jax.random.split(key, 3)

    D = 32                                              # input_dim of the Linear layer
    lengths_np = np.array([5, 7, 4], dtype=np.int32)    # per-dialogue utterance counts
    N = int(lengths_np.sum())                           # 16 packed utterance rows

    bound = 1.0 / np.sqrt(D)
    W = jax.random.uniform(k_w, (D, D), jnp.float32, -bound, bound)
    b = jax.random.uniform(k_b, (D,), jnp.float32, -bound, bound)
    h = jax.random.normal(k_h, (N, D), jnp.float32)
    text_len = jnp.asarray(lengths_np)

    ref = _reference(np.asarray(h), lengths_np, np.asarray(W), np.asarray(b))

    # f32 parity run with tiny tiles so the (query-tile x key-block) grid, the
    # online softmax and the segment masking are all exercised (grid = (2, 2)).
    out_f32 = masked_emotion_att(h, text_len, W, b, tq=8, kb=8,
                                 matmul_dtype=jnp.float32)
    out_f32 = jax.block_until_ready(out_f32)
    np.testing.assert_allclose(np.asarray(out_f32), ref, rtol=1e-5, atol=1e-5)

    # Production-style tiles with bf16 MXU operands (f32 accumulation / softmax);
    # tolerance loosened accordingly (bf16 operands cannot hold 1e-5 parity).
    out_bf16 = masked_emotion_att(h, text_len, W, b, tq=128, kb=128,
                                  matmul_dtype=jnp.bfloat16)
    out_bf16 = jax.block_until_ready(out_bf16)
    np.testing.assert_allclose(np.asarray(out_bf16), ref, rtol=1e-1, atol=1e-1)

    # TODO(synk): for very long dialogues on v7x, also shrink tq/kb or store h/x in
    # bf16 in HBM to halve the window DMA traffic (kernel is DMA-bound at large N).
    print("KERNEL_OK")
</pallas_src>

<mosaic_0001>
module attributes {stable_mosaic.version = 11 : i64} {
  func.func @_seg_flash_kernel(%arg0: i32, %arg1: i32, %arg2: memref<2xi32, #tpu.memory_space<smem>>, %arg3: memref<2xi32, #tpu.memory_space<smem>>, %arg4: memref<8x1xi32, #tpu.memory_space<vmem>>, %arg5: memref<8x1xi32, #tpu.memory_space<vmem>>, %arg6: memref<8x128xf32, #tpu.memory_space<vmem>>, %arg7: memref<8x128xf32, #tpu.memory_space<vmem>>, %arg8: memref<8x128xf32, #tpu.memory_space<vmem>>, %arg9: memref<8x128xf32, #tpu.memory_space<vmem>>, %arg10: memref<8x1xf32, #tpu.memory_space<vmem>>, %arg11: memref<8x1xf32, #tpu.memory_space<vmem>>, %arg12: memref<8x128xf32, #tpu.memory_space<vmem>>) attributes {dimension_semantics = [#tpu.dimension_semantics<parallel>, #tpu.dimension_semantics<arbitrary>], iteration_bounds = array<i64: 2, 2>, scalar_prefetch = 2 : i64, scratch_operands = 3 : i64, tpu.core_type = #tpu.core_type<tc>, window_params = [{transform_indices = @transform_0, window_bounds = array<i64: 8, 1>}, {transform_indices = @transform_1, window_bounds = array<i64: 8, 1>}, {transform_indices = @transform_2, window_bounds = array<i64: 8, 128>}, {transform_indices = @transform_3, window_bounds = array<i64: 8, 128>}, {transform_indices = @transform_4, window_bounds = array<i64: 8, 128>}, {transform_indices = @transform_5, window_bounds = array<i64: 8, 128>}]} {
    %c0_i32 = arith.constant 0 : i32
    %0 = arith.cmpi eq, %arg1, %c0_i32 : i32
    %1 = arith.extui %0 : i1 to i32
    %c0_i32_0 = arith.constant 0 : i32
    %2 = arith.cmpi ne, %1, %c0_i32_0 : i32
    scf.if %2 {
      %cst = arith.constant -1.000000e+30 : f32
      %11 = vector.broadcast %cst : f32 to vector<8x1xf32>
      %c0 = arith.constant 0 : index
      %c0_3 = arith.constant 0 : index
      %12 = vector.load %arg10[%c0, %c0_3] : memref<8x1xf32, #tpu.memory_space<vmem>>, vector<8x1xf32>
      tpu.vector_store %arg10[%c0, %c0_3], %11 {strides = array<i32>} : memref<8x1xf32, #tpu.memory_space<vmem>>, vector<8x1xf32>,
      %cst_4 = arith.constant 0.000000e+00 : f32
      %13 = vector.broadcast %cst_4 : f32 to vector<8x1xf32>
      %c0_5 = arith.constant 0 : index
      %c0_6 = arith.constant 0 : index
      %14 = vector.load %arg11[%c0_5, %c0_6] : memref<8x1xf32, #tpu.memory_space<vmem>>, vector<8x1xf32>
      tpu.vector_store %arg11[%c0_5, %c0_6], %13 {strides = array<i32>} : memref<8x1xf32, #tpu.memory_space<vmem>>, vector<8x1xf32>,
      %cst_7 = arith.constant 0.000000e+00 : f32
      %15 = vector.broadcast %cst_7 : f32 to vector<8x128xf32>
      %c0_8 = arith.constant 0 : index
      %c0_9 = arith.constant 0 : index
      %16 = vector.load %arg12[%c0_8, %c0_9] : memref<8x128xf32, #tpu.memory_space<vmem>>, vector<8x128xf32>
      tpu.vector_store %arg12[%c0_8, %c0_9], %15 {strides = array<i32>} : memref<8x128xf32, #tpu.memory_space<vmem>>, vector<8x128xf32>,
    } else {
    }
    %3 = arith.index_cast %arg0 : i32 to index
    %4 = memref.load %arg3[%3] : memref<2xi32, #tpu.memory_space<smem>>
    %5 = arith.cmpi slt, %arg1, %4 : i32
    %6 = arith.extui %5 : i1 to i32
    %c0_i32_1 = arith.constant 0 : i32
    %7 = arith.cmpi ne, %6, %c0_i32_1 : i32
    scf.if %7 {
      %c0 = arith.constant 0 : index
      %c0_3 = arith.constant 0 : index
      %11 = vector.load %arg6[%c0, %c0_3] : memref<8x128xf32, #tpu.memory_space<vmem>>, vector<8x128xf32>
      %c0_4 = arith.constant 0 : index
      %c0_5 = arith.constant 0 : index
      %12 = vector.load %arg7[%c0_4, %c0_5] : memref<8x128xf32, #tpu.memory_space<vmem>>, vector<8x128xf32>
      %cst = arith.constant dense<0.000000e+00> : vector<8x8xf32>
      %13 = tpu.matmul %11, %12, %cst {dimension_numbers = #tpu.dot_dimension_numbers<[1], [1], [0], [0], [0, 0, 1, 0], [], []>} : vector<8x128xf32>, vector<8x128xf32>, vector<8x8xf32> -> vector<8x8xf32>
      %14 = arith.index_cast %arg0 : i32 to index
      %15 = memref.load %arg2[%14] : memref<2xi32, #tpu.memory_space<smem>>
      %16 = arith.addi %15, %arg1 : i32
      %c8_i32 = arith.constant 8 : i32
      %17 = arith.muli %16, %c8_i32 : i32
      %18 = tpu.iota {dimensions = array<i32: 1>} : vector<8x8xi32>
      %19 = vector.broadcast %17 : i32 to vector<8x8xi32>
      %20 = arith.addi %18, %19 : vector<8x8xi32>
      %c0_6 = arith.constant 0 : index
      %c0_7 = arith.constant 0 : index
      %21 = vector.load %arg4[%c0_6, %c0_7] : memref<8x1xi32, #tpu.memory_space<vmem>>, vector<8x1xi32>
      %22 = vector.broadcast %21 : vector<8x1xi32> to vector<8x8xi32>
      %23 = arith.cmpi sge, %20, %22 : vector<8x8xi32>
      %c0_8 = arith.constant 0 : index
      %c0_9 = arith.constant 0 : index
      %24 = vector.load %arg5[%c0_8, %c0_9] : memref<8x1xi32, #tpu.memory_space<vmem>>, vector<8x1xi32>
      %25 = vector.broadcast %24 : vector<8x1xi32> to vector<8x8xi32>
      %26 = arith.cmpi slt, %20, %25 : vector<8x8xi32>
      %27 = arith.andi %23, %26 : vector<8x8xi1>
      %cst_10 = arith.constant -1.000000e+30 : f32
      %28 = vector.broadcast %cst_10 : f32 to vector<8x8xf32>
      %29 = arith.select %27, %13, %28 : vector<8x8xi1>, vector<8x8xf32>
      %c0_11 = arith.constant 0 : index
      %c0_12 = arith.constant 0 : index
      %30 = vector.load %arg10[%c0_11, %c0_12] : memref<8x1xf32, #tpu.memory_space<vmem>>, vector<8x1xf32>
      %cst_13 = arith.constant dense<0xFF800000> : vector<8xf32>
      %31 = vector.multi_reduction <maximumf>, %29, %cst_13 [1] : vector<8x8xf32> to vector<8xf32>
      %32 = vector.shape_cast %31 : vector<8xf32> to vector<8x1xf32>
      %33 = arith.maximumf %30, %32 : vector<8x1xf32>
      %34 = arith.subf %30, %33 : vector<8x1xf32>
      %35 = math.exp %34 : vector<8x1xf32>
      %36 = vector.broadcast %33 : vector<8x1xf32> to vector<8x8xf32>
      %37 = arith.subf %29, %36 : vector<8x8xf32>
      %38 = math.exp %37 : vector<8x8xf32>
      %c0_14 = arith.constant 0 : index
      %c0_15 = arith.constant 0 : index
      %39 = vector.load %arg11[%c0_14, %c0_15] : memref<8x1xf32, #tpu.memory_space<vmem>>, vector<8x1xf32>
      %40 = arith.mulf %35, %39 : vector<8x1xf32>
      %cst_16 = arith.constant dense<0.000000e+00> : vector<8xf32>
      %41 = vector.multi_reduction <add>, %38, %cst_16 [1] : vector<8x8xf32> to vector<8xf32>
      %42 = vector.shape_cast %41 : vector<8xf32> to vector<8x1xf32>
      %43 = arith.addf %40, %42 : vector<8x1xf32>
      %c0_17 = arith.constant 0 : index
      %c0_18 = arith.constant 0 : index
      %44 = vector.load %arg11[%c0_17, %c0_18] : memref<8x1xf32, #tpu.memory_space<vmem>>, vector<8x1xf32>
      tpu.vector_store %arg11[%c0_17, %c0_18], %43 {strides = array<i32>} : memref<8x1xf32, #tpu.memory_space<vmem>>, vector<8x1xf32>,
      %c0_19 = arith.constant 0 : index
      %c0_20 = arith.constant 0 : index
      %45 = vector.load %arg12[%c0_19, %c0_20] : memref<8x128xf32, #tpu.memory_space<vmem>>, vector<8x128xf32>
      %46 = vector.broadcast %35 : vector<8x1xf32> to vector<8x128xf32>
      %47 = arith.mulf %46, %45 : vector<8x128xf32>
      %c0_21 = arith.constant 0 : index
      %c0_22 = arith.constant 0 : index
      %48 = vector.load %arg8[%c0_21, %c0_22] : memref<8x128xf32, #tpu.memory_space<vmem>>, vector<8x128xf32>
      %cst_23 = arith.constant dense<0.000000e+00> : vector<8x128xf32>
      %49 = tpu.matmul %38, %48, %cst_23 {dimension_numbers = #tpu.dot_dimension_numbers<[1], [0], [0], [1], [0, 0, 1, 1], [], []>} : vector<8x8xf32>, vector<8x128xf32>, vector<8x128xf32> -> vector<8x128xf32>
      %50 = arith.addf %47, %49 : vector<8x128xf32>
      %c0_24 = arith.constant 0 : index
      %c0_25 = arith.constant 0 : index
      %51 = vector.load %arg12[%c0_24, %c0_25] : memref<8x128xf32, #tpu.memory_space<vmem>>, vector<8x128xf32>
      tpu.vector_store %arg12[%c0_24, %c0_25], %50 {strides = array<i32>} : memref<8x128xf32, #tpu.memory_space<vmem>>, vector<8x128xf32>,
      %c0_26 = arith.constant 0 : index
      %c0_27 = arith.constant 0 : index
      %52 = vector.load %arg10[%c0_26, %c0_27] : memref<8x1xf32, #tpu.memory_space<vmem>>, vector<8x1xf32>
      tpu.vector_store %arg10[%c0_26, %c0_27], %33 {strides = array<i32>} : memref<8x1xf32, #tpu.memory_space<vmem>>, vector<8x1xf32>,
    } else {
    }
    %c1_i32 = arith.constant 1 : i32
    %8 = arith.cmpi eq, %arg1, %c1_i32 : i32
    %9 = arith.extui %8 : i1 to i32
    %c0_i32_2 = arith.constant 0 : i32
    %10 = arith.cmpi ne, %9, %c0_i32_2 : i32
    scf.if %10 {
      %c0 = arith.constant 0 : index
      %c0_3 = arith.constant 0 : index
      %11 = vector.load %arg12[%c0, %c0_3] : memref<8x128xf32, #tpu.memory_space<vmem>>, vector<8x128xf32>
      %c0_4 = arith.constant 0 : index
      %c0_5 = arith.constant 0 : index
      %12 = vector.load %arg11[%c0_4, %c0_5] : memref<8x1xf32, #tpu.memory_space<vmem>>, vector<8x1xf32>
      %13 = tpu.reciprocal %12 : vector<8x1xf32> -> vector<8x1xf32>
      %14 = vector.broadcast %13 : vector<8x1xf32> to vector<8x128xf32>
      %15 = arith.mulf %11, %14 : vector<8x128xf32>
      %c0_6 = arith.constant 0 : index
      %c0_7 = arith.constant 0 : index
      %16 = vector.load %arg9[%c0_6, %c0_7] : memref<8x128xf32, #tpu.memory_space<vmem>>, vector<8x128xf32>
      tpu.vector_store %arg9[%c0_6, %c0_7], %15 {strides = array<i32>} : memref<8x128xf32, #tpu.memory_space<vmem>>, vector<8x128xf32>,
    } else {
    }
    return
  }
  func.func @transform_0(%arg0: i32, %arg1: i32, %arg2: memref<2xi32, #tpu.memory_space<smem>>, %arg3: memref<2xi32, #tpu.memory_space<smem>>) -> (i32, i32) {
    %c0_i32 = arith.constant 0 : i32
    %c0_i32_0 = arith.constant 0 : i32
    return %arg0, %c0_i32 : i32, i32
  }
  func.func @transform_1(%arg0: i32, %arg1: i32, %arg2: memref<2xi32, #tpu.memory_space<smem>>, %arg3: memref<2xi32, #tpu.memory_space<smem>>) -> (i32, i32) {
    %c0_i32 = arith.constant 0 : i32
    %c0_i32_0 = arith.constant 0 : i32
    return %arg0, %c0_i32 : i32, i32
  }
  func.func @transform_2(%arg0: i32, %arg1: i32, %arg2: memref<2xi32, #tpu.memory_space<smem>>, %arg3: memref<2xi32, #tpu.memory_space<smem>>) -> (i32, i32) {
    %c0_i32 = arith.constant 0 : i32
    %c0_i32_0 = arith.constant 0 : i32
    return %arg0, %c0_i32 : i32, i32
  }
  func.func @transform_3(%arg0: i32, %arg1: i32, %arg2: memref<2xi32, #tpu.memory_space<smem>>, %arg3: memref<2xi32, #tpu.memory_space<smem>>) -> (i32, i32) {
    %0 = arith.index_cast %arg0 : i32 to index
    %1 = memref.load %arg2[%0] : memref<2xi32, #tpu.memory_space<smem>>
    %2 = arith.addi %1, %arg1 : i32
    %c1_i32 = arith.constant 1 : i32
    %3 = arith.minsi %2, %c1_i32 : i32
    %c0_i32 = arith.constant 0 : i32
    %c0_i32_0 = arith.constant 0 : i32
    return %3, %c0_i32 : i32, i32
  }
  func.func @transform_4(%arg0: i32, %arg1: i32, %arg2: memref<2xi32, #tpu.memory_space<smem>>, %arg3: memref<2xi32, #tpu.memory_space<smem>>) -> (i32, i32) {
    %0 = arith.index_cast %arg0 : i32 to index
    %1 = memref.load %arg2[%0] : memref<2xi32, #tpu.memory_space<smem>>
    %2 = arith.addi %1, %arg1 : i32
    %c1_i32 = arith.constant 1 : i32
    %3 = arith.minsi %2, %c1_i32 : i32
    %c0_i32 = arith.constant 0 : i32
    %c0_i32_0 = arith.constant 0 : i32
    return %3, %c0_i32 : i32, i32
  }
  func.func @transform_5(%arg0: i32, %arg1: i32, %arg2: memref<2xi32, #tpu.memory_space<smem>>, %arg3: memref<2xi32, #tpu.memory_space<smem>>) -> (i32, i32) {
    %c0_i32 = arith.constant 0 : i32
    %c0_i32_0 = arith.constant 0 : i32
    return %arg0, %c0_i32 : i32, i32
  }
}

</mosaic_0001>

<bundles_post_ra>
// kernel: tpu_custom_call.1
= control target key start
LH: loop header
LB: loop body
LE: loop exit
PB: predicated region body
PF: predicated region fallthrough
CT: control target
= control target key end

     0   :  { %s1219_s0 = inlined_call_operand.vmem [shape: s32[2], index: 0, kind: input, shape index: {}]   ;;  %s1220_s2 = inlined_call_operand.vmem [shape: s32[16,1], index: 2, kind: input, shape index: {}]   ;;  %s1221_s3 = inlined_call_operand.vmem [shape: s32[16,1], index: 3, kind: input, shape index: {}]   ;;  %s1222_s4 = inlined_call_operand.vmem [shape: f32[16,128], index: 4, kind: input, shape index: {}]   ;;  %s1223_s5 = inlined_call_operand.vmem [shape: f32[16,128], index: 5, kind: input, shape index: {}]   ;;  %s1224_s6 = inlined_call_operand.vmem [shape: f32[16,128], index: 6, kind: input, shape index: {}]   ;;  %s1225_s7 = inlined_call_operand.hbm [shape: f32[16,128], index: 7, kind: output, shape index: {}]   ;;  %s1226_s1 = inlined_call_operand.hbm [shape: s32[2], index: 1, kind: input, shape index: {}]  }
   0x1   :  { %1231 = sst [smem:[#allocation17_spill]] %s1220_s2  ;;  %s12_s26 = sshll.u32 %s1219_s0, 4  ;;  %s13_s26 = int_to_ptr.vmem [resolvable:$true] %s12_s26 }
   0x2   :  { %s853_s27 = scalar_lea.vmem %s13_s26, 16  ;;  %p858_p1 = scmp.lt.s32.totalorder %s13_s26, %s13_s26 }
   0x3   :  { %p854_p0 = scmp.ne.s32.totalorder %s13_s26, %s853_s27  ;;  %p859_p2 = scmp.lt.s32.totalorder %s853_s27, %s853_s27 }
   0x5   :  { %p860_p3 = por %p859_p2, %p858_p1 }
   0x7   :  { %p861_p4 = pnand %p860_p3, %p854_p0 }
   0x9   :  { %864 = shalt.err (!%p861_p4)  }
   0xa   :  { %s973_s28 = smov [#allocation6]   ;;  %s865_s8 = scalar_lea.hbm %s1226_s1, 16 }
   0xb   :  { %15 = dma.vmem_to_smem %s13_s26, 16, %s973_s28, [#allocation5] }
   0xc   :  { %p866_p5 = scmp.ne.s32.totalorder %s1226_s1, %s865_s8  ;;  %p869_p6 = scmp.lt.u32.totalorder %s865_s8, %s1226_s1 }
   0xe   :  { %p871_p7 = pnand %p869_p6, %p866_p5 }
  0x10   :  { %874 = shalt.err (!%p871_p7)  }
  0x11   :  { %s974_s12 = smov [#allocation7]  }
  0x12   :  { %17 = dma.hbm_to_smem %s1226_s1, 16, %s974_s12, [#allocation5] }
  0x13   :  { %935 = dma.done.wait [#allocation5], 32 }
  0x14   :  { %936 = vsyncadd [#allocation5], 4294967264 }
  0x15   :  { %19 = sfence }
  0x16   :  { %20 = vsyncpa [#allocation9], 0 }
  0x17   :  { %22 = vsyncpa [#allocation9 + $0x1], 0  ;;  %s1037_s15 = smov 0   ;;  %s1039_s16 = smov 0  }
  0x18   :  { %s1041_s17 = smov 0   ;;  %s1043_s18 = smov 0  }
  0x19   :  { %s1045_s19 = smov 0   ;;  %s1047_s20 = smov 0  }
  0x1a   :  { %s1049_s21 = smov 0   ;;  %s1051_s1 = smov 0  }
  0x1b LB: > { %1232 = sst [smem:[#allocation12_spill]] %s963_s20  ;;  %s725_s22 = sadd.s32 4294967295, %s971_s1   ;;  %s971_s1 = sphi %s1051_s1, %s28_s1   ;;  %s967_s21 = sphi %s1049_s21, %s1246_s21   ;;  %s963_s20 = sphi %s1047_s20, %s1245_s20   ;;  %s959_s19 = sphi %s1045_s19, %s1244_s19   ;;  %s955_s18 = sphi %s1043_s18, %s1243_s18   ;;  %s951_s17 = sphi %s1041_s17, %s1249_s17   ;;  %s947_s16 = sphi %s1039_s16, %s1248_s16   ;;  %s943_s15 = sphi %s1037_s15, %s1247_s15  }
  0x1c   : > { %1233 = sst [smem:[#allocation13_spill]] %s967_s21  ;;  %s726_s23 = sadd.s32 4294967294, %s971_s1  }
  0x1d   : > { %s37_s24 = sadd.s32 1, %s963_s20  ;;  %s40_s25 = sadd.s32 1, %s967_s21 }
  0x1e   : > { %p38_p8 = scmp.ge.s32.totalorder %s37_s24, 2  ;;  %p203_p9 = scmp.ne.s32.totalorder %s951_s17, %s947_s16 }
  0x1f   : > { %p204_p10 = scmp.eq.s32.totalorder %s725_s22, 3  ;;  %p209_p12 = scmp.ne.s32.totalorder %s947_s16, %s943_s15 }
  0x20   : > { %s1251_s24 = smov (%p38_p8, %s37_s24), 0  ;;  %s1253_s25 = smov (!%p38_p8, %s40_s25), %s967_s21 }
  0x21   : > { %1234 = sst [smem:[#allocation14_spill]] %s1251_s24  ;;  %p1086_p11 = por %p204_p10, %p203_p9 }
  0x22   : > { %p42_p13 = scmp.ge.s32.totalorder %s1253_s25, 2  ;;  %p210_p0 = scmp.eq.s32.totalorder %s726_s23, 3 }
  0x23   : > { %p729_p1 = scmp.ge.s32.totalorder %s971_s1, 1  ;;  %p279_p2 = scmp.lt.s32.totalorder %s971_s1, 5 }
  0x24   : > { %s1255_s25 = smov (%p42_p13, %s1253_s25), 0  ;;  %p1096_p3 = por %p210_p0, %p209_p12 }
  0x25   : > { %1236 = sst [smem:[#allocation15_spill]] %s1255_s25  ;;  %p280_p4 = pnand %p729_p1, %p279_p2 }
  0x26   : > { %s190_s28 = ssub.s32 %s967_s21, %s1255_s25  ;;  %s193_s29 = sadd.s32 1, %s951_s17 }
  0x27   : > { %p191_p5 = scmp.eq.s32.totalorder %s190_s28, 0  ;;  %283 = sbr.rel (%p280_p4) target bundleno = 955 (0x3bb), region = 40 }
  0x28   : > { %s1228_s8 = sand.u32 (!%p280_p4), 1, %s947_s16   ;;  %p330_p6 = scmp.lt.s32.totalorder (!%p280_p4), %s959_s19, 1 }
  0x29   : > { %s1104_s30 = scalar_select %p191_p5, %s951_s17, %s193_s29  }
  0x2a   : > { %s1110_s9 = sshll.u32 (!%p280_p4), %s1228_s8, 3  ;;  %s342_s10 = sld [smem:[#allocation6 + %s959_s19]] (!%p280_p4) }
  0x2b   : > { %1238 = sst [smem:[#allocation16_spill]] %s1104_s30  ;;  %s1239_s2 = sld [smem:[#allocation17_spill]] (!%p280_p4) }
  0x2c   : > { %s354_s11 = sld [smem:[#allocation6 + %s959_s19]] (!%p280_p4)  ;;  %s329_s25 = scalar_lea.vmem (!%p280_p4), [#allocation8], %s1110_s9 }
  0x2d   : > { %p742_p9 = scmp.ne.s32.totalorder (!%p280_p4), %s955_s18, 0 }
  0x2e   : > { %s331_s0 = scalar_select %p330_p6, %s959_s19, 1 }
  0x2f   : > { %vm370_vm0 = vcmask (!%p742_p9), 7168   ;;  %v975_v0 = vmov (!%p742_p9), -1e+30   ;;  %v976_v1 = vmov (!%p742_p9), 0.0  }
  0x30   : > { %s1115_s12 = sshll.u32 %s331_s0, 3  ;;  %s343_s21 = sadd.s32 %s955_s18, %s342_s10  ;;  %371 = vst.msk [vmem:[#allocation2] sm:$0xff] (!%p742_p9), %vm370_vm0, %v975_v0  ;;  %372 = vst.msk [vmem:[#allocation3] sm:$0xff] (!%p742_p9), %vm370_vm0, %v976_v1 }
  0x31   : > { %s333_s22 = scalar_lea.vmem %s1239_s2, %s1115_s12  ;;  %s341_s24 = scalar_lea.vmem %s1222_s4, %s1115_s12  ;;  %373 = vst [vmem:[#allocation4] sm:$0xff] (!%p742_p9), %v976_v1 }
  0x32   : > { %p344_p7 = scmp.lt.s32.totalorder %s343_s21, 1  ;;  %s355_s0 = sadd.s32 %s955_s18, %s354_s11 }
  0x33   : > { %p356_p8 = scmp.lt.s32.totalorder %s355_s0, 1  ;;  %369 = sbr.rel (%p742_p9) target bundleno = 58 (0x3a), region = 44 }
  0x34   : > { %s1257_s21 = smov (!%p344_p7, %s343_s21), 1 }
  0x35   : > { %s1259_s0 = smov (!%p356_p8, %s355_s0), 1  ;;  %s1261_s21 = smov (!%p344_p7, %s1257_s21), 1 }
  0x36   : > { %s1263_s0 = smov (!%p356_p8, %s1259_s0), 1  ;;  %s737_s13 = sshll.u32 %s1261_s21, 3 }
  0x37   : > { %s349_s2 = scalar_lea.vmem %s1223_s5, %s737_s13  ;;  %s741_s30 = sshll.u32 %s1263_s0, 3 }
  0x38   : > { %s1137_s29 = scalar_lea.vmem %s1224_s6, %s741_s30 }
  0x3a PF: > { %s374_s20 = sld [smem:[#allocation7 + %s959_s19]] }
  0x40   : > { %p743_p10 = scmp.ge.s32.totalorder %s955_s18, %s374_s20 }
  0x41   : > { %v380_v2 = vld [vmem:[%s349_s2] sm:$0xff] (!%p743_p10)  ;;  %v977_v4 = vmov (!%p743_p10), 0.0   ;;  %vm978_vm1 = vmmov (!%p743_p10), 0   ;;  %v979_v6 = vmov (!%p743_p10), 0   ;;  %s1240_s10 = scalar_lea.vmem (!%p743_p10), %s1221_s3, %s1115_s12  ;;  %s451_s11 = sld [smem:[#allocation6 + %s959_s19]] (!%p743_p10)  ;;  %v454_v8 = vlaneseq (!%p743_p10)  ;;  %v487_v30 = vld [vmem:[#allocation3] sm:$0xff] (!%p743_p10) }
  0x42   : > { %378 = sbr.rel (%p743_p10) target bundleno = 786 (0x312), region = 48  ;;  %v458_v3 = vld [vmem:[%s333_s22] sm:$0xff] (!%p743_p10)  ;;  %755 = vmatprep.subr.mxu0 (!%p743_p10), %v977_v4  ;;  %757 = vmatprep.mubr.msk.f32.mxu0 (!%p743_p10), %vm978_vm1, %v977_v4  ;;  %vm471_vm4 = vcmask (!%p743_p10), 64512   ;;  %vm493_vm6 = vcmask (!%p743_p10), 7168   ;;  %v495_v34 = vld [vmem:[#allocation4] sm:$0xff] (!%p743_p10) }
  0x43   : > { %756 = vmatpush3.xpose.msra.mxu0 (!%p743_p10), %v380_v2  ;;  %v379_v5 = vld [vmem:[%s341_s24] sm:$0xff] (!%p743_p10)  ;;  %844 = vset.pattern.permute.xlu0 (!%p743_p10), %v979_v6  ;;  %v455_v10 = vand.u32 (!%p743_p10), 127, %v454_v8 }
  0x44   : > { %460 = vperm.xlu0 (!%p743_p10), %844, %v458_v3   ;;  %845 = vset.pattern.permute.xlu1 (!%p743_p10), %v979_v6  ;;  %v463_v7 = vld [vmem:[%s1240_s10] sm:$0xff] (!%p743_p10) }
  0x45   : > { %760 = vmatprep.subr.mxu1 (!%p743_p10), %v977_v4  ;;  %762 = vmatprep.mubr.msk.f32.mxu1 (!%p743_p10), %vm978_vm1, %v977_v4  ;;  %v470_v18 = vld [vmem:[#allocation2] sm:$0xff] (!%p743_p10) }
  0x46   : > { %758 = vmatmul.mubr.f32.vlgmr.msra.gmra.mrb[0].mxu0 (!%p743_p10), %v379_v5  ;;  %v502_v23 = vld [vmem:[%s1137_s29] sm:$0xff] (!%p743_p10) }
  0x47   : > { %s452_s22 = sadd.s32 (!%p743_p10), %s955_s18, %s451_s11  ;;  %761 = vmatpush3.msra.mxu1 (!%p743_p10), %v502_v23 }
  0x48   : > { %465 = vperm.xlu0 (!%p743_p10), %844, %v463_v7   ;;  %s744_s0 = sshll.u32 (!%p743_p10), %s452_s22, 3 }
  0x49   : > { %v456_v11 = vstv %s744_s0 }
  0x4a   : > { %v457_v12 = vadd.s32 %v456_v11, %v455_v10 }
  0xc3   : > { %v461_v9 = vpop.permute.xlu0 %460 }
  0xc4   : > { %vm462_vm2 = vcmp.ge.s32.totalorder %v457_v12, %v461_v9 }
  0xc7   : > { %v466_v13 = vpop.permute.xlu0 %465 }
  0xc8   : > { %vm467_vm3 = vcmp.lt.s32.totalorder %v457_v12, %v466_v13 }
  0xc9   : > { %vm468_vm5 = vmand %vm462_vm2, %vm467_vm3 }
 0x119   : > { %v447_v14 = vpop.f32.mrb[0].mxu0 }
 0x11a   : > { %v469_v15 = vsel %vm468_vm5, %v447_v14, -1e+30  ;;  %v759_v16 = vpop.f32.mrb[1].mxu0 }
 0x11b   : > { %v472_v17 = vsel %vm471_vm4, %v469_v15, -inf }
 0x11c   : > { %473 = vmax.xlane.f32.xlu1 %v472_v17 }
 0x1a9   : > { %v474_v19 = vpop.xlane.xlu1 %473 }
 0x1aa   : > { %v475_v20 = vmax.f32 %v470_v18, %v474_v19 }
 0x1ac   : > { %v476_v21 = vsub.f32 %v470_v18, %v475_v20  ;;  %578 = vst.msk [vmem:[#allocation2] sm:$0xff] %vm493_vm6, %v475_v20  ;;  %481 = vperm.xlu1 %845, %v475_v20  }
 0x1ae   : > { %v477_v22 = vmul.f32 1.442695, %v476_v21 }
 0x1b0   : > { %846 = vpow2.f32 %v477_v22 }
 0x1ba   : > { %v847_v24 = vpop.eup %846 }
 0x1bb   : > { %498 = vperm.xlu1 %845, %v847_v24   ;;  %v488_v31 = vmul.f32 %v847_v24, %v487_v30 }
 0x22b   : > { %v482_v25 = vpop.permute.xlu1 %481 }
 0x22c   : > { %v484_v26 = vsub.f32 %v469_v15, %v482_v25 }
 0x22e   : > { %v485_v27 = vmul.f32 1.442695, %v484_v26 }
 0x230   : > { %848 = vpow2.f32 %v485_v27 }
 0x23a   : > { %v849_v28 = vpop.eup %848  ;;  %v499_v35 = vpop.permute.xlu1 %498 }
 0x23b   : > { %763 = vmatmul.mubr.msk.f32.vlgmr.msra.gmra.mrb[0].mxu1 %vm471_vm4, %v849_v28  ;;  %v489_v29 = vsel %vm471_vm4, %v849_v28, 0.0  ;;  %v501_v36 = vmul.f32 %v499_v35, %v495_v34 }
 0x23c   : > { %490 = vadd.xlane.f32.xlu0 %v489_v29 }
 0x2c9   : > { %v491_v32 = vpop.xlane.xlu0 %490 }
 0x2ca   : > { %v492_v33 = vadd.f32 %v491_v32, %v488_v31 }
 0x2cc   : > { %494 = vst.msk [vmem:[#allocation3] sm:$0xff] %vm493_vm6, %v492_v33 }
 0x30e   : > { %v572_v37 = vpop.f32.mrb[0].mxu1 }
 0x30f   : > { %v576_v38 = vadd.f32 %v572_v37, %v501_v36  ;;  %v764_v39 = vpop.f32.mrb[1].mxu1 }
 0x311   : > { %577 = vst [vmem:[#allocation4] sm:$0xff] %v576_v38 }
 0x312 PF: > { %p746_p12 = scmp.ne.s32.totalorder %s955_s18, 1 }
 0x313   : > { %v584_v40 = vld [vmem:[#allocation3] sm:$0xff] (!%p746_p12)  ;;  %v980_v41 = vmov (!%p746_p12), 0  }
 0x314   : > { %582 = sbr.rel (%p746_p12) target bundleno = 930 (0x3a2), region = 52  ;;  %850 = vset.pattern.permute.xlu0 (!%p746_p12), %v980_v41  ;;  %851 = vrcp.f32 (!%p746_p12), %v584_v40 }
 0x318   : > { %v583_v43 = vld [vmem:[#allocation4] sm:$0xff] (!%p746_p12) }
 0x31e   : > { %v852_v42 = vpop.eup %851 }
 0x31f   : > { %588 = vperm.xlu0 %850, %v852_v42  }
 0x39e   : > { %v589_v44 = vpop.permute.xlu0 %588 }
 0x39f   : > { %v591_v45 = vmul.f32 %v589_v44, %v583_v43 }
 0x3a1   : > { %592 = vst [vmem:[%s329_s25] sm:$0xff] %v591_v45 }
 0x3a2 PF: > { %s748_s24 = sshll.u32 %s959_s19, 7  ;;  %s607_s13 = sshll.u32 %s329_s25, 4  ;;  %s608_s13 = int_to_ptr.vmem [resolvable:$true] %s607_s13 }
 0x3a3   : > { %s1168_s29 = scalar_lea.hbm %s1225_s7, %s748_s24  ;;  %s1241_s14 = sand.u32 1, %s947_s16  }
 0x3a4   : > { %s594_s23 = scalar_lea.sflag [#allocation9], %s1241_s14  ;;  %s875_s28 = scalar_lea.vmem %s608_s13, 128 }
 0x3a5   : > { %p876_p13 = scmp.ne.s32.totalorder %s608_s13, %s875_s28  ;;  %s981_s20 = smov [#allocation8]  }
 0x3a6   : > { %s879_s21 = sshll.u32 %s981_s20, 4  ;;  %s880_s21 = int_to_ptr.vmem [resolvable:$false] %s879_s21 }
 0x3a7   : > { %p877_p0 = pnand %p876_p13, %p1086_p11  ;;  %s881_s30 = scalar_lea.vmem %s880_s21, 256 }
 0x3a8   : > { %p882_p2 = scmp.lt.s32.totalorder %s608_s13, %s880_s21  ;;  %p883_p4 = scmp.lt.s32.totalorder %s881_s30, %s875_s28 }
 0x3a9   : > { %p878_p1 = pneg %p877_p0 }
 0x3aa   : > { %p884_p5 = por %p883_p4, %p882_p2 }
 0x3ac   : > { %p885_p6 = pnand %p884_p5, %p878_p1 }
 0x3ae   : > { %888 = shalt.err (!%p885_p6)
}
 0x3af   : > { %s889_s19 = scalar_lea.hbm %s1168_s29, 128  ;;  %s893_s2 = scalar_lea.hbm %s1225_s7, 256 }
 0x3b0   : > { %p890_p7 = scmp.ne.s32.totalorder %s1168_s29, %s889_s19  ;;  %p894_p10 = scmp.lt.u32.totalorder %s1168_s29, %s1225_s7 }
 0x3b1   : > { %p895_p12 = scmp.lt.u32.totalorder %s893_s2, %s889_s19  ;;  %p897_p0 = scmp.lt.u32.totalorder %s889_s19, %s1168_s29 }
 0x3b2   : > { %p891_p8 = pnand %p890_p7, %p1086_p11 }
 0x3b3   : > { %p896_p13 = por %p895_p12, %p894_p10 }
 0x3b4   : > { %p892_p9 = pneg %p891_p8 }
 0x3b5   : > { %p898_p1 = por %p897_p0, %p896_p13 }
 0x3b7   : > { %p899_p2 = pnand %p898_p1, %p892_p9 }
 0x3b9   : > { %902 = shalt.err (!%p899_p2)
}
 0x3ba   : > { %765 = dma.vmem_to_hbm [thread:$0]  (%p1086_p11), %s608_s13, 128, %s1168_s29, %s594_s23  }
 0x3bb PF: > { %p771_p4 = scmp.ge.s32.totalorder %s971_s1, 2  ;;  %s619_s11 = sand.u32 1, %s943_s15  }
 0x3bc   : > { %s620_s22 = scalar_lea.sflag [#allocation9], %s619_s11 }
 0x3bd   : > { %p768_p5 = pnand %p771_p4, %p1096_p3 }
 0x3bf   : > { %938 = dma.done.wait (!%p768_p5), %s620_s22, 128  }
 0x3c0   : > { %940 = vsyncadd (!%p768_p5), %s620_s22, 4294967168  ;;  %s28_s1 = sadd.s32 1, %s971_s1   ;;  %s1242_s0 = sld [smem:[#allocation16_spill]] }
 0x3c1   : > { %p25_p6 = scmp.ge.s32.totalorder %s28_s1, 6   ;;  %s1243_s18 = sld [smem:[#allocation12_spill]] }
 0x3c2   : > { %s1244_s19 = sld [smem:[#allocation13_spill]]  ;;  %s1245_s20 = sld [smem:[#allocation14_spill]] }
 0x3c3   : > { %s1246_s21 = sld [smem:[#allocation15_spill]]  ;;  %s1247_s15 = smov %s947_s16 }
 0x3c4   : > { %s1248_s16 = smov %s951_s17  ;;  %27 = sbr.rel (!%p25_p6) target bundleno = 27 (0x1b), region = 99 }
 0x3c6   : > { %s1249_s17 = smov %s1242_s0 }
 0x3cb   :  { %625 = vsyncpa [#allocation9], 1 }
 0x3cc   :  { %627 = vsyncpa [#allocation9 + $0x1], 1 }

</bundles_post_ra>
